<compile_context>
chip_gen: v6e
topology: v6e:2x2x1
jax: 0.10.0
libtpu: 0.0.40
codegen_flags: <defaults>
</compile_context>

<pallas_src>
import functools

import jax
import jax.numpy as jnp
from jax.experimental import pallas as pl
from jax.experimental.pallas import tpu as pltpu


def _round_up(x, m=128):
    return ((x + m - 1) // m) * m


# -----------------------------------------------------------------------------
# Fused kernel: one grid step per temporal snapshot
# -----------------------------------------------------------------------------
def _fused_multistep_gnn_kernel(*refs, num_steps, n_layers, leaky_flags, slope,
                                combine_method):
    s_ref, x_ref = refs[0], refs[1]                    # (1,N,N) bf16 / (1,N,in_pad) bf16
    w_refs = refs[2:2 + n_layers]                      # (1, din_pad, dout_pad) bf16
    b_refs = refs[2 + n_layers:2 + 2 * n_layers]       # (1, 1, dout_pad)      f32
    fcw_ref = refs[2 + 2 * n_layers]                   # (comb_pad, 128)       bf16
    fcb_ref = refs[3 + 2 * n_layers]                   # (1, 128)              f32
    comb_ref, pre_ref, sig_ref = refs[4 + 2 * n_layers:]

    t = pl.program_id(0)

    @pl.when(t == 0)
    def _init():
        comb_ref[...] = jnp.zeros_like(comb_ref)

    s_t = s_ref[0]                        # (N, N)       bf16
    h = x_ref[0]                          # (N, in_pad)  bf16
    h32 = None
    for l in range(n_layers):             # static, small L: unrolled
        # (X @ W) first (dimension-reducing), then S @ (XW): bf16 x bf16 on MXU,
        # f32 accumulation.
        xw = jnp.dot(h, w_refs[l][0], preferred_element_type=jnp.float32)
        h32 = jnp.dot(s_t, xw.astype(jnp.bfloat16),
                      preferred_element_type=jnp.float32) + b_refs[l][0]
        if leaky_flags[l]:
            h32 = jnp.where(h32 >= 0, h32, slope * h32)   # LeakyReLU (VPU, f32)
        h = h32.astype(jnp.bfloat16)
        # TODO(synk): dropout after the nonlinearity is identity (eval mode).

    # Last-layer weights of step t live at lane offset t*out_dim (concat) or
    # offset 0 (mean); the combine is therefore a plain f32 add into the
    # resident (revisited) output block.
    comb_ref[...] += h32

    @pl.when(t == num_steps - 1)
    def _finalize():
        comb = comb_ref[...]
        if combine_method == "mean":
            comb = comb * (1.0 / num_steps)
            comb_ref[...] = comb
        pre = jnp.dot(comb.astype(jnp.bfloat16), fcw_ref[...],
                      preferred_element_type=jnp.float32) + fcb_ref[...]
        pre_ref[...] = pre.astype(pre_ref.dtype)
        sig_ref[...] = jax.nn.sigmoid(pre).astype(sig_ref.dtype)
        # TODO(synk): classifier nn.Dropout is identity (eval mode).


# -----------------------------------------------------------------------------
# One-time parameter packing (per-layer lane padding, bf16 matmul operands)
# -----------------------------------------------------------------------------
def pack_gnn_params(gnn_params_list, fc_W, fc_b, combine_method):
    T = len(gnn_params_list)
    L = len(gnn_params_list[0])
    out_dim = int(gnn_params_list[0][-1][0].shape[1])
    fc_in, fc_out = int(fc_W.shape[0]), int(fc_W.shape[1])
    comb_width = out_dim * T if combine_method == "concat" else out_dim
    assert fc_in == comb_width, "fc_layer input dim inconsistent with combine_method"

    # All time steps must share one architecture (layer dims + nonlin flags);
    # the kernel applies a single per-layer flag tuple.
    layer_dims = [(int(W.shape[0]), int(W.shape[1])) for (W, _b, _f) in gnn_params_list[0]]
    leaky_flags = tuple(bool(f) for (_W, _b, f) in gnn_params_list[0])
    for layers in gnn_params_list:
        assert len(layers) == L
        assert [(int(W.shape[0]), int(W.shape[1])) for (W, _b, _f) in layers] == layer_dims
        assert tuple(bool(f) for (_W, _b, f) in layers) == leaky_flags

    comb_pad = _round_up(comb_width)
    in_pads, out_pads = [], []
    for l, (d_in, d_out) in enumerate(layer_dims):
        in_pads.append(_round_up(d_in) if l == 0 else out_pads[l - 1])
        out_pads.append(comb_pad if l == L - 1 else _round_up(d_out))

    f32, bf16 = jnp.float32, jnp.bfloat16
    w_stacks, b_stacks = [], []
    for l, (d_in, d_out) in enumerate(layer_dims):
        w = jnp.zeros((T, in_pads[l], out_pads[l]), f32)
        b = jnp.zeros((T, 1, out_pads[l]), f32)
        for t, layers in enumerate(gnn_params_list):
            W_tl, b_tl, _f = layers[l]
            # Last layer of step t placed at lane offset t*out_dim -> concat by
            # construction inside the kernel.
            off = t * out_dim if (combine_method == "concat" and l == L - 1) else 0
            w = w.at[t, :d_in, off:off + d_out].set(W_tl.astype(f32))
            b = b.at[t, 0, off:off + d_out].set(b_tl.astype(f32))
        w_stacks.append(w.astype(bf16))   # bf16 MXU operand
        b_stacks.append(b)                # f32 bias (added post-matmul)

    fc_out_pad = _round_up(fc_out)        # 128 lanes for fc_out=1
    fcw = (jnp.zeros((comb_pad, fc_out_pad), f32)
           .at[:fc_in, :fc_out].set(fc_W.astype(f32)).astype(bf16))
    fcb = jnp.zeros((1, fc_out_pad), f32).at[0, :fc_out].set(fc_b.astype(f32))

    meta = dict(num_steps=T, n_layers=L, out_dim=out_dim,
                comb_width=comb_width, comb_pad=comb_pad,
                fc_out=fc_out, fc_out_pad=fc_out_pad,
                in_pad=in_pads[0], leaky_flags=leaky_flags,
                combine_method=combine_method)
    return (tuple(w_stacks), tuple(b_stacks), fcw, fcb), meta


def pack_activations(x_list, S_norm_list, meta):
    """One-time activation packing (hoisted out of the forward): stack per-step
    features/adjacencies, lane-pad X to the first layer's padded input width,
    cast both to bf16 MXU operands."""
    T = meta["num_steps"]
    in_pad = meta["in_pad"]
    N, in_dim = x_list[0].shape
    x_all = jnp.zeros((T, N, in_pad), jnp.float32)
    x_all = x_all.at[:, :, :in_dim].set(jnp.stack([x.astype(jnp.float32) for x in x_list]))
    s_all = jnp.stack([S.astype(jnp.float32) for S in S_norm_list])   # (T, N, N)
    return x_all.astype(jnp.bfloat16), s_all.astype(jnp.bfloat16)


# -----------------------------------------------------------------------------
# Forward: single pallas_call with grid=(T,), then slice lane-dense slabs
# -----------------------------------------------------------------------------
def multistep_gnn_forward(x_all, s_all, packed_params, meta, slope=0.01):
    w_stacks, b_stacks, fcw, fcb = packed_params
    T, L = meta["num_steps"], meta["n_layers"]
    N = x_all.shape[1]
    comb_pad, fc_out_pad = meta["comb_pad"], meta["fc_out_pad"]

    kernel = functools.partial(
        _fused_multistep_gnn_kernel,
        num_steps=T, n_layers=L, leaky_flags=meta["leaky_flags"],
        slope=slope, combine_method=meta["combine_method"])

    def step_spec(shape):
        # Leading axis is the time step: one snapshot's block per grid step,
        # double-buffered by the default pipeline.
        ndim = len(shape)
        return pl.BlockSpec((1,) + tuple(shape[1:]),
                            lambda t, _n=ndim: (t,) + (0,) * (_n - 1))

    def const_spec(shape, single_buffer=False):
        ndim = len(shape)
        index_map = lambda t, _n=ndim: (0,) * _n
        if single_buffer:
            # Constant block index: double buffering buys nothing.
            return pl.BlockSpec(tuple(shape), index_map,
                                pipeline_mode=pl.Buffered(1))
        return pl.BlockSpec(tuple(shape), index_map)

    in_specs = ([step_spec(s_all.shape), step_spec(x_all.shape)]
                + [step_spec(w.shape) for w in w_stacks]
                + [step_spec(b.shape) for b in b_stacks]
                + [const_spec(fcw.shape, single_buffer=True),
                   const_spec(fcb.shape, single_buffer=True)])

    out_shape = (jax.ShapeDtypeStruct((N, comb_pad), jnp.float32),
                 jax.ShapeDtypeStruct((N, fc_out_pad), jnp.float32),
                 jax.ShapeDtypeStruct((N, fc_out_pad), jnp.float32))
    out_specs = (const_spec((N, comb_pad)),
                 const_spec((N, fc_out_pad)),
                 const_spec((N, fc_out_pad)))

    comb_slab, pre_slab, sig_slab = pl.pallas_call(
        kernel,
        out_shape=out_shape,
        grid=(T,),
        in_specs=in_specs,
        out_specs=out_specs,
        compiler_params=pltpu.CompilerParams(
            # Accumulating into the resident output block across steps ->
            # the step axis must be 'arbitrary'.
            dimension_semantics=("arbitrary",),
            # Explicit scoped-VMEM budget (v5e default is only 16 MiB); keep
            # well under v7x's 64 MiB physical VMEM.
            vmem_limit_bytes=32 * 1024 * 1024),
    )(s_all, x_all, *w_stacks, *b_stacks, fcw, fcb)

    output = sig_slab[:, :meta["fc_out"]]
    combined = comb_slab[:, :meta["comb_width"]]
    pre_sigmoid = pre_slab[:, :meta["fc_out"]]
    return output, combined, pre_sigmoid


# -----------------------------------------------------------------------------
# Parameter construction (deterministic, mirrors the PyTorch __init__ shapes)
# -----------------------------------------------------------------------------
def normalize_adjacency(S, eps=1e-6):
    """S <- S + I ;  D^{-1/2} S D^{-1/2}  (glue, plain JAX)."""
    N = S.shape[0]
    S = S + jnp.eye(N, dtype=S.dtype)
    d = S.sum(axis=1)
    d_inv_sqrt = 1.0 / jnp.sqrt(d + eps)
    return (d_inv_sqrt[:, None] * S) * d_inv_sqrt[None, :]


def kaiming_uniform(key, fan_in, fan_out):
    bound = jnp.sqrt(6.0 / fan_in)
    return jax.random.uniform(key, (fan_in, fan_out), jnp.float32, -bound, bound)


def make_gcn_params(key, n_layers, in_dim, hid_dim, out_dim):
    """Returns list of (W, b, apply_leaky) per layer."""
    dims = []
    if n_layers > 1:
        dims.append((in_dim, hid_dim))
        for _ in range(n_layers - 2):
            dims.append((hid_dim, hid_dim))
        dims.append((hid_dim, out_dim))
    else:
        dims.append((in_dim, out_dim))
    params = []
    for li, (di, do) in enumerate(dims):
        key, kw, kb = jax.random.split(key, 3)
        W = kaiming_uniform(kw, di, do)
        std = 1.0 / (di * do)
        b = jax.random.uniform(kb, (do,), jnp.float32, -std, std)
        apply_leaky = li < (len(dims) - 1)      # nonlin on all but last layer
        params.append((W, b, apply_leaky))
    return params


# -----------------------------------------------------------------------------
# Pure-JAX references for correctness checks
# -----------------------------------------------------------------------------
def reference_forward_f32(x_list, S_list, gnn_params_list, fc_W, fc_b,
                          combine_method="concat", slope=0.01):
    embs = []
    for x, S, layers in zip(x_list, S_list, gnn_params_list):
        h = x
        for (W, b, leaky) in layers:
            h = S @ h @ W + b[None, :]
            if leaky:
                h = jnp.where(h >= 0, h, slope * h)
        embs.append(h)
    if combine_method == "concat":
        comb = jnp.concatenate(embs, axis=1) if len(embs) > 1 else embs[0]
    else:
        comb = jnp.stack(embs, axis=0).mean(axis=0)
    pre = comb @ fc_W + fc_b[None, :]
    return jax.nn.sigmoid(pre), comb, pre


def reference_forward_bf16(x_list, S_list, gnn_params_list, fc_W, fc_b,
                           combine_method="concat", slope=0.01):
    """Same cast points / matmul order as the kernel (bf16 operands, f32 accum)."""
    bf16 = jnp.bfloat16
    embs = []
    for x, S, layers in zip(x_list, S_list, gnn_params_list):
        h = x.astype(bf16)
        S_bf = S.astype(bf16)
        h32 = None
        for (W, b, leaky) in layers:
            xw = jnp.dot(h, W.astype(bf16), preferred_element_type=jnp.float32)
            h32 = jnp.dot(S_bf, xw.astype(bf16),
                          preferred_element_type=jnp.float32) + b.astype(jnp.float32)[None, :]
            if leaky:
                h32 = jnp.where(h32 >= 0, h32, slope * h32)
            h = h32.astype(bf16)
        embs.append(h32)
    if combine_method == "concat":
        comb = jnp.concatenate(embs, axis=1) if len(embs) > 1 else embs[0]
    else:
        comb = jnp.stack(embs, axis=0).mean(axis=0)
    pre = jnp.dot(comb.astype(bf16), fc_W.astype(bf16),
                  preferred_element_type=jnp.float32) + fc_b.astype(jnp.float32)[None, :]
    return jax.nn.sigmoid(pre), comb, pre


# -----------------------------------------------------------------------------
# Driver
# -----------------------------------------------------------------------------
if __name__ == "__main__":
    key = jax.random.PRNGKey(0)

    # Small shapes consistent with the module
    N = 16           # number of graph nodes
    in_dim = 8
    hid_dim = 32
    out_dim = 16     # per-step GCN embedding dim
    n_layers = 2
    num_steps = 2
    combine_method = "concat"

    # Adjacency matrices (symmetric, binary) and node features per time step
    key, *sub = jax.random.split(key, 1 + 2 * num_steps)
    S_norm_list, x_list = [], []
    for t in range(num_steps):
        a = (jax.random.uniform(sub[2 * t], (N, N)) > 0.7).astype(jnp.float32)
        S = jnp.maximum(a, a.T)
        S_norm_list.append(normalize_adjacency(S))
        x_list.append(jax.random.normal(sub[2 * t + 1], (N, in_dim), jnp.float32))

    # Per-time-step GCN parameters
    gnn_params_list = []
    for t in range(num_steps):
        key, kg = jax.random.split(key)
        gnn_params_list.append(make_gcn_params(kg, n_layers, in_dim, hid_dim, out_dim))

    # Classifier (Linear) parameters
    fc_in = out_dim * num_steps if combine_method == "concat" else out_dim
    fc_out = 1
    key, kw, kb = jax.random.split(key, 3)
    bound = 1.0 / jnp.sqrt(jnp.float32(fc_in))
    fc_W = jax.random.uniform(kw, (fc_in, fc_out), jnp.float32, -bound, bound)
    fc_b = jax.random.uniform(kb, (fc_out,), jnp.float32, -bound, bound)

    # One-time packing (params + activations), then fused forward
    packed, meta = pack_gnn_params(gnn_params_list, fc_W, fc_b, combine_method)
    x_all, s_all = pack_activations(x_list, S_norm_list, meta)
    output, combined, pre_sigmoid = multistep_gnn_forward(x_all, s_all, packed, meta)
    jax.block_until_ready((output, combined, pre_sigmoid))

    # Shape checks
    assert output.shape == (N, fc_out)
    assert pre_sigmoid.shape == (N, fc_out)
    assert combined.shape == (N, meta["comb_width"])

    # Tight check vs. a reference that uses the same bf16 cast points / order
    bo, bc, bp = reference_forward_bf16(x_list, S_norm_list, gnn_params_list,
                                        fc_W, fc_b, combine_method)
    assert bool(jnp.allclose(combined, bc, rtol=2e-3, atol=2e-3)), "combined (bf16 ref) mismatch"
    assert bool(jnp.allclose(pre_sigmoid, bp, rtol=2e-3, atol=2e-3)), "pre_sigmoid (bf16 ref) mismatch"
    assert bool(jnp.allclose(output, bo, rtol=2e-3, atol=2e-3)), "output (bf16 ref) mismatch"

    # Semantic check vs. full-f32 reference (loose tolerance: bf16 MXU operands)
    fo, fc_, fp = reference_forward_f32(x_list, S_norm_list, gnn_params_list,
                                        fc_W, fc_b, combine_method)
    assert bool(jnp.allclose(combined, fc_, rtol=5e-2, atol=5e-2)), "combined (f32 ref) mismatch"
    assert bool(jnp.allclose(pre_sigmoid, fp, rtol=5e-2, atol=5e-2)), "pre_sigmoid (f32 ref) mismatch"
    assert bool(jnp.allclose(output, fo, rtol=5e-2, atol=5e-2)), "output (f32 ref) mismatch"

    print("KERNEL_OK")
</pallas_src>

<mosaic_0001>
module attributes {stable_mosaic.version = 11 : i64} {
  func.func @_fused_multistep_gnn_kernel(%arg0: i32, %arg1: memref<1x16x16xbf16, #tpu.memory_space<vmem>>, %arg2: memref<1x16x128xbf16, #tpu.memory_space<vmem>>, %arg3: memref<1x128x128xbf16, #tpu.memory_space<vmem>>, %arg4: memref<1x128x128xbf16, #tpu.memory_space<vmem>>, %arg5: memref<1x1x128xf32, #tpu.memory_space<vmem>>, %arg6: memref<1x1x128xf32, #tpu.memory_space<vmem>>, %arg7: memref<128x128xbf16, #tpu.memory_space<vmem>>, %arg8: memref<1x128xf32, #tpu.memory_space<vmem>>, %arg9: memref<16x128xf32, #tpu.memory_space<vmem>>, %arg10: memref<16x128xf32, #tpu.memory_space<vmem>>, %arg11: memref<16x128xf32, #tpu.memory_space<vmem>>) attributes {dimension_semantics = [#tpu.dimension_semantics<arbitrary>], iteration_bounds = array<i64: 2>, scalar_prefetch = 0 : i64, scratch_operands = 0 : i64, tpu.core_type = #tpu.core_type<tc>, window_params = [{transform_indices = @transform_0, window_bounds = array<i64: 1, 16, 16>}, {transform_indices = @transform_1, window_bounds = array<i64: 1, 16, 128>}, {transform_indices = @transform_2, window_bounds = array<i64: 1, 128, 128>}, {transform_indices = @transform_3, window_bounds = array<i64: 1, 128, 128>}, {transform_indices = @transform_4, window_bounds = array<i64: 1, 1, 128>}, {transform_indices = @transform_5, window_bounds = array<i64: 1, 1, 128>}, {pipeline_mode = #tpu.pipeline_mode<synchronous>, transform_indices = @transform_6, window_bounds = array<i64: 128, 128>}, {pipeline_mode = #tpu.pipeline_mode<synchronous>, transform_indices = @transform_7, window_bounds = array<i64: 1, 128>}, {pipeline_mode = #tpu.pipeline_mode<synchronous>, transform_indices = @transform_8, window_bounds = array<i64: 16, 128>}, {pipeline_mode = #tpu.pipeline_mode<synchronous>, transform_indices = @transform_9, window_bounds = array<i64: 16, 128>}, {pipeline_mode = #tpu.pipeline_mode<synchronous>, transform_indices = @transform_10, window_bounds = array<i64: 16, 128>}]} {
    %c0_i32 = arith.constant 0 : i32
    %0 = arith.cmpi eq, %arg0, %c0_i32 : i32
    %1 = arith.extui %0 : i1 to i32
    %c0_i32_0 = arith.constant 0 : i32
    %2 = arith.cmpi ne, %1, %c0_i32_0 : i32
    scf.if %2 {
      %cst_28 = arith.constant 0.000000e+00 : f32
      %37 = vector.broadcast %cst_28 : f32 to vector<16x128xf32>
      %c0_29 = arith.constant 0 : index
      %c0_30 = arith.constant 0 : index
      %38 = vector.load %arg9[%c0_29, %c0_30] : memref<16x128xf32, #tpu.memory_space<vmem>>, vector<16x128xf32>
      tpu.vector_store %arg9[%c0_29, %c0_30], %37 {strides = array<i32>} : memref<16x128xf32, #tpu.memory_space<vmem>>, vector<16x128xf32>,
    } else {
    }
    %c0 = arith.constant 0 : index
    %c0_1 = arith.constant 0 : index
    %c0_2 = arith.constant 0 : index
    %3 = vector.load %arg1[%c0, %c0_1, %c0_2] : memref<1x16x16xbf16, #tpu.memory_space<vmem>>, vector<1x16x16xbf16>
    %4 = vector.shape_cast %3 : vector<1x16x16xbf16> to vector<16x16xbf16>
    %c0_3 = arith.constant 0 : index
    %c0_4 = arith.constant 0 : index
    %c0_5 = arith.constant 0 : index
    %5 = vector.load %arg2[%c0_3, %c0_4, %c0_5] : memref<1x16x128xbf16, #tpu.memory_space<vmem>>, vector<1x16x128xbf16>
    %6 = vector.shape_cast %5 : vector<1x16x128xbf16> to vector<16x128xbf16>
    %c0_6 = arith.constant 0 : index
    %c0_7 = arith.constant 0 : index
    %c0_8 = arith.constant 0 : index
    %7 = vector.load %arg3[%c0_6, %c0_7, %c0_8] : memref<1x128x128xbf16, #tpu.memory_space<vmem>>, vector<1x128x128xbf16>
    %8 = vector.shape_cast %7 : vector<1x128x128xbf16> to vector<128x128xbf16>
    %cst = arith.constant dense<0.000000e+00> : vector<16x128xf32>
    %9 = tpu.matmul %6, %8, %cst {dimension_numbers = #tpu.dot_dimension_numbers<[1], [0], [0], [1], [0, 0, 1, 1], [], []>} : vector<16x128xbf16>, vector<128x128xbf16>, vector<16x128xf32> -> vector<16x128xf32>
    %10 = arith.truncf %9 : vector<16x128xf32> to vector<16x128xbf16>
    %cst_9 = arith.constant dense<0.000000e+00> : vector<16x128xf32>
    %11 = tpu.matmul %4, %10, %cst_9 {dimension_numbers = #tpu.dot_dimension_numbers<[1], [0], [0], [1], [0, 0, 1, 1], [], []>} : vector<16x16xbf16>, vector<16x128xbf16>, vector<16x128xf32> -> vector<16x128xf32>
    %c0_10 = arith.constant 0 : index
    %c0_11 = arith.constant 0 : index
    %c0_12 = arith.constant 0 : index
    %12 = vector.load %arg5[%c0_10, %c0_11, %c0_12] : memref<1x1x128xf32, #tpu.memory_space<vmem>>, vector<1x1x128xf32>
    %13 = vector.shape_cast %12 : vector<1x1x128xf32> to vector<1x128xf32>
    %14 = vector.broadcast %13 : vector<1x128xf32> to vector<16x128xf32>
    %15 = arith.addf %11, %14 : vector<16x128xf32>
    %cst_13 = arith.constant 0.000000e+00 : f32
    %16 = vector.broadcast %cst_13 : f32 to vector<16x128xf32>
    %17 = arith.cmpf oge, %15, %16 : vector<16x128xf32>
    %cst_14 = arith.constant 0.00999999977 : f32
    %18 = vector.broadcast %cst_14 : f32 to vector<16x128xf32>
    %19 = arith.mulf %18, %15 : vector<16x128xf32>
    %20 = arith.select %17, %15, %19 : vector<16x128xi1>, vector<16x128xf32>
    %21 = arith.truncf %20 : vector<16x128xf32> to vector<16x128xbf16>
    %c0_15 = arith.constant 0 : index
    %c0_16 = arith.constant 0 : index
    %c0_17 = arith.constant 0 : index
    %22 = vector.load %arg4[%c0_15, %c0_16, %c0_17] : memref<1x128x128xbf16, #tpu.memory_space<vmem>>, vector<1x128x128xbf16>
    %23 = vector.shape_cast %22 : vector<1x128x128xbf16> to vector<128x128xbf16>
    %cst_18 = arith.constant dense<0.000000e+00> : vector<16x128xf32>
    %24 = tpu.matmul %21, %23, %cst_18 {dimension_numbers = #tpu.dot_dimension_numbers<[1], [0], [0], [1], [0, 0, 1, 1], [], []>} : vector<16x128xbf16>, vector<128x128xbf16>, vector<16x128xf32> -> vector<16x128xf32>
    %25 = arith.truncf %24 : vector<16x128xf32> to vector<16x128xbf16>
    %cst_19 = arith.constant dense<0.000000e+00> : vector<16x128xf32>
    %26 = tpu.matmul %4, %25, %cst_19 {dimension_numbers = #tpu.dot_dimension_numbers<[1], [0], [0], [1], [0, 0, 1, 1], [], []>} : vector<16x16xbf16>, vector<16x128xbf16>, vector<16x128xf32> -> vector<16x128xf32>
    %c0_20 = arith.constant 0 : index
    %c0_21 = arith.constant 0 : index
    %c0_22 = arith.constant 0 : index
    %27 = vector.load %arg6[%c0_20, %c0_21, %c0_22] : memref<1x1x128xf32, #tpu.memory_space<vmem>>, vector<1x1x128xf32>
    %28 = vector.shape_cast %27 : vector<1x1x128xf32> to vector<1x128xf32>
    %29 = vector.broadcast %28 : vector<1x128xf32> to vector<16x128xf32>
    %30 = arith.addf %26, %29 : vector<16x128xf32>
    %c0_23 = arith.constant 0 : index
    %c0_24 = arith.constant 0 : index
    %31 = vector.load %arg9[%c0_23, %c0_24] : memref<16x128xf32, #tpu.memory_space<vmem>>, vector<16x128xf32>
    %32 = arith.addf %31, %30 : vector<16x128xf32>
    %c0_25 = arith.constant 0 : index
    %c0_26 = arith.constant 0 : index
    %33 = vector.load %arg9[%c0_25, %c0_26] : memref<16x128xf32, #tpu.memory_space<vmem>>, vector<16x128xf32>
    tpu.vector_store %arg9[%c0_25, %c0_26], %32 {strides = array<i32>} : memref<16x128xf32, #tpu.memory_space<vmem>>, vector<16x128xf32>,
    %c1_i32 = arith.constant 1 : i32
    %34 = arith.cmpi eq, %arg0, %c1_i32 : i32
    %35 = arith.extui %34 : i1 to i32
    %c0_i32_27 = arith.constant 0 : i32
    %36 = arith.cmpi ne, %35, %c0_i32_27 : i32
    scf.if %36 {
      %c0_28 = arith.constant 0 : index
      %c0_29 = arith.constant 0 : index
      %37 = vector.load %arg9[%c0_28, %c0_29] : memref<16x128xf32, #tpu.memory_space<vmem>>, vector<16x128xf32>
      %38 = arith.truncf %37 : vector<16x128xf32> to vector<16x128xbf16>
      %c0_30 = arith.constant 0 : index
      %c0_31 = arith.constant 0 : index
      %39 = vector.load %arg7[%c0_30, %c0_31] : memref<128x128xbf16, #tpu.memory_space<vmem>>, vector<128x128xbf16>
      %cst_32 = arith.constant dense<0.000000e+00> : vector<16x128xf32>
      %40 = tpu.matmul %38, %39, %cst_32 {dimension_numbers = #tpu.dot_dimension_numbers<[1], [0], [0], [1], [0, 0, 1, 1], [], []>} : vector<16x128xbf16>, vector<128x128xbf16>, vector<16x128xf32> -> vector<16x128xf32>
      %c0_33 = arith.constant 0 : index
      %c0_34 = arith.constant 0 : index
      %41 = vector.load %arg8[%c0_33, %c0_34] : memref<1x128xf32, #tpu.memory_space<vmem>>, vector<1x128xf32>
      %42 = vector.broadcast %41 : vector<1x128xf32> to vector<16x128xf32>
      %43 = arith.addf %40, %42 : vector<16x128xf32>
      %c0_35 = arith.constant 0 : index
      %c0_36 = arith.constant 0 : index
      %44 = vector.load %arg10[%c0_35, %c0_36] : memref<16x128xf32, #tpu.memory_space<vmem>>, vector<16x128xf32>
      tpu.vector_store %arg10[%c0_35, %c0_36], %43 {strides = array<i32>} : memref<16x128xf32, #tpu.memory_space<vmem>>, vector<16x128xf32>,
      %45 = arith.negf %43 : vector<16x128xf32>
      %46 = math.exp %45 : vector<16x128xf32>
      %cst_37 = arith.constant 1.000000e+00 : f32
      %47 = vector.broadcast %cst_37 : f32 to vector<16x128xf32>
      %48 = arith.addf %47, %46 : vector<16x128xf32>
      %49 = arith.divf %47, %48 : vector<16x128xf32>
      %c0_38 = arith.constant 0 : index
      %c0_39 = arith.constant 0 : index
      %50 = vector.load %arg11[%c0_38, %c0_39] : memref<16x128xf32, #tpu.memory_space<vmem>>, vector<16x128xf32>
      tpu.vector_store %arg11[%c0_38, %c0_39], %49 {strides = array<i32>} : memref<16x128xf32, #tpu.memory_space<vmem>>, vector<16x128xf32>,
    } else {
    }
    return
  }
  func.func @transform_0(%arg0: i32) -> (i32, i32, i32) {
    %c0_i32 = arith.constant 0 : i32
    %c0_i32_0 = arith.constant 0 : i32
    %c0_i32_1 = arith.constant 0 : i32
    return %arg0, %c0_i32, %c0_i32_0 : i32, i32, i32
  }
  func.func @transform_1(%arg0: i32) -> (i32, i32, i32) {
    %c0_i32 = arith.constant 0 : i32
    %c0_i32_0 = arith.constant 0 : i32
    %c0_i32_1 = arith.constant 0 : i32
    return %arg0, %c0_i32, %c0_i32_0 : i32, i32, i32
  }
  func.func @transform_2(%arg0: i32) -> (i32, i32, i32) {
    %c0_i32 = arith.constant 0 : i32
    %c0_i32_0 = arith.constant 0 : i32
    %c0_i32_1 = arith.constant 0 : i32
    return %arg0, %c0_i32, %c0_i32_0 : i32, i32, i32
  }
  func.func @transform_3(%arg0: i32) -> (i32, i32, i32) {
    %c0_i32 = arith.constant 0 : i32
    %c0_i32_0 = arith.constant 0 : i32
    %c0_i32_1 = arith.constant 0 : i32
    return %arg0, %c0_i32, %c0_i32_0 : i32, i32, i32
  }
  func.func @transform_4(%arg0: i32) -> (i32, i32, i32) {
    %c0_i32 = arith.constant 0 : i32
    %c0_i32_0 = arith.constant 0 : i32
    %c0_i32_1 = arith.constant 0 : i32
    return %arg0, %c0_i32, %c0_i32_0 : i32, i32, i32
  }
  func.func @transform_5(%arg0: i32) -> (i32, i32, i32) {
    %c0_i32 = arith.constant 0 : i32
    %c0_i32_0 = arith.constant 0 : i32
    %c0_i32_1 = arith.constant 0 : i32
    return %arg0, %c0_i32, %c0_i32_0 : i32, i32, i32
  }
  func.func @transform_6(%arg0: i32) -> (i32, i32) {
    %c0_i32 = arith.constant 0 : i32
    %c0_i32_0 = arith.constant 0 : i32
    %c0_i32_1 = arith.constant 0 : i32
    return %c0_i32, %c0_i32_0 : i32, i32
  }
  func.func @transform_7(%arg0: i32) -> (i32, i32) {
    %c0_i32 = arith.constant 0 : i32
    %c0_i32_0 = arith.constant 0 : i32
    %c0_i32_1 = arith.constant 0 : i32
    return %c0_i32, %c0_i32_0 : i32, i32
  }
  func.func @transform_8(%arg0: i32) -> (i32, i32) {
    %c0_i32 = arith.constant 0 : i32
    %c0_i32_0 = arith.constant 0 : i32
    %c0_i32_1 = arith.constant 0 : i32
    return %c0_i32, %c0_i32_0 : i32, i32
  }
  func.func @transform_9(%arg0: i32) -> (i32, i32) {
    %c0_i32 = arith.constant 0 : i32
    %c0_i32_0 = arith.constant 0 : i32
    %c0_i32_1 = arith.constant 0 : i32
    return %c0_i32, %c0_i32_0 : i32, i32
  }
  func.func @transform_10(%arg0: i32) -> (i32, i32) {
    %c0_i32 = arith.constant 0 : i32
    %c0_i32_0 = arith.constant 0 : i32
    %c0_i32_1 = arith.constant 0 : i32
    return %c0_i32, %c0_i32_0 : i32, i32
  }
}

</mosaic_0001>

<bundles_post_ra>
// kernel: tpu_custom_call.1
= control target key start
LH: loop header
LB: loop body
LE: loop exit
PB: predicated region body
PF: predicated region fallthrough
CT: control target
= control target key end

     0   :  { %s2196_s0 = inlined_call_operand.hbm [shape: bf16[2,16,16], index: 0, kind: input, shape index: {}]   ;;  %s2197_s1 = inlined_call_operand.hbm [shape: bf16[2,16,128], index: 1, kind: input, shape index: {}]   ;;  %s2198_s2 = inlined_call_operand.hbm [shape: bf16[2,128,128], index: 2, kind: input, shape index: {}]   ;;  %s2199_s3 = inlined_call_operand.hbm [shape: bf16[2,128,128], index: 3, kind: input, shape index: {}]   ;;  %s2200_s4 = inlined_call_operand.vmem [shape: f32[2,1,128], index: 4, kind: input, shape index: {}]   ;;  %s2201_s5 = inlined_call_operand.vmem [shape: f32[2,1,128], index: 5, kind: input, shape index: {}]   ;;  %s2202_s6 = inlined_call_operand.hbm [shape: bf16[128,128], index: 6, kind: input, shape index: {}]   ;;  %s2203_s7 = inlined_call_operand.vmem [shape: f32[1,128], index: 7, kind: input, shape index: {}]   ;;  %s2204_s8 = inlined_call_operand.hbm [shape: f32[16,128], index: 8, kind: output, shape index: {0}]   ;;  %s2205_s9 = inlined_call_operand.hbm [shape: f32[16,128], index: 9, kind: output, shape index: {1}]   ;;  %s2206_s10 = inlined_call_operand.hbm [shape: f32[16,128], index: 10, kind: output, shape index: {2}]  }
   0x1   :  { %2221 = sst [smem:[#allocation24_spill]] %s2197_s1 }
   0x2   :  { %2222 = sst [smem:[#allocation25_spill]] %s2202_s6 }
   0x3   :  { %2223 = sst [smem:[#allocation26_spill]] %s2206_s10 }
   0x4   :  { %16 = vsyncpa [#allocation3], 0 }
   0x5   :  { %18 = vsyncpa [#allocation3 + $0x1], 0 }
   0x6   :  { %19 = vsyncpa [#allocation6], 0 }
   0x7   :  { %21 = vsyncpa [#allocation6 + $0x1], 0 }
   0x8   :  { %22 = vsyncpa [#allocation9], 0 }
   0x9   :  { %24 = vsyncpa [#allocation9 + $0x1], 0 }
   0xa   :  { %25 = vsyncpa [#allocation4], 0 }
   0xb   :  { %26 = vsyncpa [#allocation13], 0  ;;  %s1841_s13 = smov 0   ;;  %s1843_s14 = smov 0  }
   0xc   :  { %s1845_s15 = smov 0   ;;  %s1847_s16 = smov 0  }
   0xd LB: > { %2224 = sst [smem:[#allocation21_spill]] %s1763_s15  ;;  %s1860_s17 = sadd.s32 4294967295, %s1767_s16   ;;  %s1767_s16 = sphi %s1847_s16, %s2249_s16   ;;  %s1763_s15 = sphi %s1845_s15, %s2251_s15   ;;  %s1759_s14 = sphi %s1843_s14, %s2253_s14   ;;  %s1755_s13 = sphi %s1841_s13, %s2252_s13  }
   0xe   : > { %s1863_s18 = sadd.s32 1, %s1767_s16   ;;  %s39_s20 = sadd.s32 1, %s1763_s15 }
   0xf   : > { %2225 = sst [smem:[#allocation22_spill]] %s1863_s18  ;;  %s36_s19 = ssub.s32 %s1767_s16, %s1863_s18 }
  0x10   : > { %p37_p0 = scmp.eq.s32.totalorder %s36_s19, 0  ;;  %p46_p1 = scmp.ne.s32.totalorder %s1763_s15, %s1759_s14 }
  0x11   : > { %p47_p2 = scmp.eq.s32.totalorder %s1767_s16, 0  ;;  %p52_p3 = scmp.ne.s32.totalorder %s1759_s14, %s1755_s13 }
  0x12   : > { %s1873_s21 = scalar_select %p37_p0, %s1763_s15, %s39_s20  }
  0x13   : > { %p1875_p4 = por %p47_p2, %p46_p1  ;;  %p2214_p5 = scmp.eq.s32.totalorder %s1860_s17, 0 }
  0x14   : > { %2226 = sst [smem:[#allocation23_spill]] %s1873_s21  ;;  %p1203_p6 = scmp.ge.s32.totalorder %s1767_s16, 1 }
  0x15   : > { %p298_p7 = scmp.lt.s32.totalorder %s1767_s16, 3  ;;  %p1884_p8 = por %p2214_p5, %p52_p3 }
  0x16   : > { %s1769_s25 = smov [#allocation10]   ;;  %p1416_p13 = scmp.lt.s32.totalorder %s1767_s16, 2 }
  0x17   : > { %s2228_s23 = scalar_select %p1884_p8, 1, 0 }
  0x18   : > { %p1889_p10 = pnand %p1203_p6, %p298_p7  ;;  %s310_s26 = sshll.u32 %s1769_s25, 4  ;;  %s311_s26 = int_to_ptr.vmem [resolvable:$true] %s310_s26 }
  0x19   : > { %s1903_s28 = sand.u32 1, %s1763_s15   ;;  %s2210_s29 = sshll.u32 %s1767_s16, 7 }
  0x1a   : > { %s2229_s24 = scalar_select %p1889_p10, 1, 0 }
  0x1b   : > { %p1398_p11 = pneg %p1889_p10  ;;  %s1514_s11 = scalar_lea.vmem %s311_s26, 1024 }
  0x1c   : > { %p1515_p1 = scmp.ne.s32.totalorder %s311_s26, %s1514_s11  ;;  %p1522_p6 = scmp.lt.s32.totalorder %s311_s26, %s311_s26 }
  0x1d   : > { %p1897_p12 = pnand %p1398_p11, %p2214_p5  ;;  %p1523_p7 = scmp.lt.s32.totalorder %s1514_s11, %s1514_s11 }
  0x1f   : > { %p1505_p0 = pneg %p1897_p12  ;;  %p1524_p9 = por %p1523_p7, %p1522_p6 }
  0x21   : > { %p1517_p2 = pnand %p1515_p1, %p1505_p0 }
  0x23   : > { %p1518_p3 = pneg %p1517_p2 }
  0x25   : > { %p1525_p11 = pnand %p1524_p9, %p1518_p3 }
  0x27   : > { %1528 = shalt.err (!%p1525_p11)
}
  0x28   : > { %s2208_s12 = smov 64   ;;  %s2212_s13 = smov 4  }
  0x29   : > { %s2231_s6 = sld [smem:[#allocation25_spill]]  ;;  %p1921_p9 = pnand %p1416_p13, %p1875_p4 }
  0x2a   : > { %s2211_s11 = sand.u32 1, %s1767_s16   ;;  %s2233_s1 = sld [smem:[#allocation24_spill]] }
  0x2b   : > { %s2234_s15 = sshll.u32 %s1903_s28, 3  ;;  %s1939_s22 = scalar_lea.sflag [#allocation6], %s2211_s11 }
  0x2c   : > { %s352_s19 = scalar_lea.vmem [#allocation5], %s2234_s15 }
  0x2f   : > { %1401 = dma.hbm_to_vmem [thread:$0]  (!%p1897_p12), %s2231_s6, 1024, %s311_s26, [#allocation9], %s2208_s12, %s2208_s12, %s2212_s13  }
  0x30   : > { %s1931_s27 = scalar_lea.hbm %s2233_s1, %s2210_s29  ;;  %s359_s26 = sshll.u32 %s352_s19, 4  ;;  %s1935_s26 = int_to_ptr.vmem [resolvable:$true] %s359_s26 }
  0x31   : > { %s1529_s20 = scalar_lea.hbm %s1931_s27, 128  ;;  %p1945_p12 = pneg %p1921_p9 }
  0x32   : > { %p1530_p4 = scmp.ne.s32.totalorder %s1931_s27, %s1529_s20  ;;  %s1534_s15 = scalar_lea.hbm %s2233_s1, 256 }
  0x33   : > { %p1535_p1 = scmp.lt.s32.totalorder %s1931_s27, %s2233_s1  ;;  %p1536_p2 = scmp.lt.s32.totalorder %s1534_s15, %s1529_s20 }
  0x34   : > { %p1532_p13 = pnand %p1945_p12, %p1530_p4 }
  0x35   : > { %p1537_p3 = por %p1536_p2, %p1535_p1 }
  0x36   : > { %p1533_p0 = pneg %p1532_p13 }
  0x38   : > { %p1538_p6 = pnand %p1537_p3, %p1533_p0 }
  0x3a   : > { %1541 = shalt.err (!%p1538_p6)
}
  0x3b   : > { %s1542_s11 = scalar_lea.vmem %s1935_s26, 128  ;;  %s1772_s13 = smov [#allocation5]  }
  0x3c   : > { %p1543_p7 = scmp.ne.s32.totalorder %s1935_s26, %s1542_s11  ;;  %s1547_s21 = sshll.u32 %s1772_s13, 4  ;;  %s1548_s21 = int_to_ptr.vmem [resolvable:$false] %s1547_s21 }
  0x3d   : > { %s1549_s30 = scalar_lea.vmem %s1548_s21, 256  ;;  %p1550_p13 = scmp.lt.s32.totalorder %s1935_s26, %s1548_s21 }
  0x3e   : > { %p1545_p11 = pnand %p1543_p7, %p1945_p12  ;;  %p1551_p5 = scmp.lt.s32.totalorder %s1549_s30, %s1542_s11 }
  0x40   : > { %p1546_p4 = pneg %p1545_p11  ;;  %p1552_p8 = por %p1551_p5, %p1550_p13 }
  0x42   : > { %p1553_p10 = pnand %p1552_p8, %p1546_p4 }
  0x44   : > { %1556 = shalt.err (!%p1553_p10)
}
  0x45   : > { %s2236_s29 = smov 4   ;;  %s2237_s20 = smov 64  }
  0x46   : > { %1408 = dma.hbm_to_vmem [thread:$0]  (!%p1921_p9), %s1931_s27, 128, %s1935_s26, %s1939_s22, %s2237_s20, %s2237_s20, %s2236_s29  }
  0x47   : > { %s2238_s13 = sshll.u32 %s1767_s16, 7  ;;  %s2239_s21 = sshll.u32 %s1903_s28, 3 }
  0x48   : > { %s1976_s19 = scalar_lea.hbm %s2196_s0, %s2238_s13  ;;  %s331_s30 = scalar_lea.vmem [#allocation2], %s2239_s21 }
  0x49   : > { %s338_s1 = sshll.u32 %s331_s30, 4  ;;  %s2219_s6 = sshll.u32 %s1903_s28, 6  ;;  %s1981_s1 = int_to_ptr.vmem [resolvable:$true] %s338_s1 }
  0x4a   : > { %s328_s18 = scalar_lea.sflag [#allocation3], %s1903_s28  ;;  %s1557_s10 = scalar_lea.hbm %s1976_s19, 128 }
  0x4b   : > { %p1558_p5 = scmp.ne.s32.totalorder %s1976_s19, %s1557_s10  ;;  %s1562_s13 = scalar_lea.hbm %s2196_s0, 256 }
  0x4c   : > { %p1563_p0 = scmp.lt.s32.totalorder %s1976_s19, %s2196_s0  ;;  %p1564_p1 = scmp.lt.s32.totalorder %s1562_s13, %s1557_s10 }
  0x4d   : > { %p1560_p8 = pnand %p1558_p5, %p1945_p12 }
  0x4e   : > { %p1565_p2 = por %p1564_p1, %p1563_p0 }
  0x4f   : > { %p1561_p10 = pneg %p1560_p8 }
  0x51   : > { %p1566_p3 = pnand %p1565_p2, %p1561_p10 }
  0x53   : > { %1569 = shalt.err (!%p1566_p3)
}
  0x54   : > { %s1570_s21 = scalar_lea.vmem %s1981_s1, 128  ;;  %s1773_s30 = smov [#allocation2]  }
  0x55   : > { %p1571_p6 = scmp.ne.s32.totalorder %s1981_s1, %s1570_s21  ;;  %s1575_s27 = sshll.u32 %s1773_s30, 4  ;;  %s1576_s27 = int_to_ptr.vmem [resolvable:$false] %s1575_s27 }
  0x56   : > { %s1577_s26 = scalar_lea.vmem %s1576_s27, 256  ;;  %p1578_p4 = scmp.lt.s32.totalorder %s1981_s1, %s1576_s27 }
  0x57   : > { %p1573_p7 = pnand %p1571_p6, %p1945_p12  ;;  %p1579_p13 = scmp.lt.s32.totalorder %s1577_s26, %s1570_s21 }
  0x59   : > { %p1574_p11 = pneg %p1573_p7  ;;  %p1580_p5 = por %p1579_p13, %p1578_p4 }
  0x5b   : > { %p1581_p8 = pnand %p1580_p5, %p1574_p11 }
  0x5d   : > { %1584 = shalt.err (!%p1581_p8)
}
  0x5e   : > { %1405 = dma.hbm_to_vmem [thread:$0]  (!%p1921_p9), %s1976_s19, 128, %s1981_s1, %s328_s18, %s2237_s20, %s2237_s20, %s2236_s29  }
  0x5f   : > { %s2220_s10 = sshll.u32 %s1767_s16, 10  ;;  %s373_s13 = scalar_lea.vmem [#allocation7], %s2219_s6 }
  0x60   : > { %s380_s15 = sshll.u32 %s373_s13, 4  ;;  %s2015_s30 = scalar_lea.hbm %s2198_s2, %s2220_s10  ;;  %s381_s15 = int_to_ptr.vmem [resolvable:$true] %s380_s15 }
  0x61   : > { %s1585_s27 = scalar_lea.hbm %s2015_s30, 1024  ;;  %s1590_s19 = scalar_lea.hbm %s2198_s2, 2048 }
  0x62   : > { %p1586_p10 = scmp.ne.s32.totalorder %s2015_s30, %s1585_s27  ;;  %p1591_p2 = scmp.lt.s32.totalorder %s2015_s30, %s2198_s2 }
  0x63   : > { %p1592_p3 = scmp.lt.s32.totalorder %s1590_s19, %s1585_s27 }
  0x64   : > { %p1588_p0 = pnand %p1586_p10, %p1945_p12 }
  0x65   : > { %p1593_p6 = por %p1592_p3, %p1591_p2 }
  0x66   : > { %p1589_p1 = pneg %p1588_p0 }
  0x68   : > { %p1594_p7 = pnand %p1593_p6, %p1589_p1 }
  0x6a   : > { %1597 = shalt.err (!%p1594_p7)
}
  0x6b   : > { %s1598_s11 = scalar_lea.vmem %s381_s15, 1024  ;;  %s1774_s21 = smov [#allocation7]  }
  0x6c   : > { %p1599_p11 = scmp.ne.s32.totalorder %s381_s15, %s1598_s11  ;;  %s1603_s6 = sshll.u32 %s1774_s21, 4  ;;  %s1604_s6 = int_to_ptr.vmem [resolvable:$false] %s1603_s6 }
  0x6d   : > { %s1605_s10 = scalar_lea.vmem %s1604_s6, 2048  ;;  %p1606_p5 = scmp.lt.s32.totalorder %s381_s15, %s1604_s6 }
  0x6e   : > { %p1601_p4 = pnand %p1599_p11, %p1945_p12  ;;  %p1607_p8 = scmp.lt.s32.totalorder %s1605_s10, %s1598_s11 }
  0x70   : > { %p1602_p13 = pneg %p1601_p4  ;;  %p1608_p10 = por %p1607_p8, %p1606_p5 }
  0x72   : > { %p1609_p0 = pnand %p1608_p10, %p1602_p13 }
  0x74   : > { %1612 = shalt.err (!%p1609_p0)
}
  0x75   : > { %1411 = dma.hbm_to_vmem [thread:$0]  (!%p1921_p9), %s2015_s30, 1024, %s381_s15, %s1939_s22, %s2237_s20, %s2237_s20, %s2236_s29  }
  0x76   : > { %s2240_s27 = sshll.u32 %s1767_s16, 10  ;;  %s2241_s10 = sshll.u32 %s1903_s28, 6 }
  0x77   : > { %s2042_s6 = scalar_lea.hbm %s2199_s3, %s2240_s27  ;;  %s394_s19 = scalar_lea.vmem [#allocation8], %s2241_s10 }
  0x78   : > { %s401_s26 = sshll.u32 %s394_s19, 4  ;;  %s2242_s13 = sand.u32 1, %s1767_s16   ;;  %s2046_s26 = int_to_ptr.vmem [resolvable:$true] %s401_s26 }
  0x79   : > { %s391_s11 = scalar_lea.sflag [#allocation9], %s2242_s13  ;;  %s1613_s21 = scalar_lea.hbm %s2042_s6, 1024 }
  0x7a   : > { %p1614_p1 = scmp.ne.s32.totalorder %s2042_s6, %s1613_s21  ;;  %s1618_s30 = scalar_lea.hbm %s2199_s3, 2048 }
  0x7b   : > { %p1619_p6 = scmp.lt.s32.totalorder %s2042_s6, %s2199_s3  ;;  %p1620_p7 = scmp.lt.s32.totalorder %s1618_s30, %s1613_s21 }
  0x7c   : > { %p1616_p2 = pnand %p1614_p1, %p1945_p12 }
  0x7d   : > { %p1621_p11 = por %p1620_p7, %p1619_p6 }
  0x7e   : > { %p1617_p3 = pneg %p1616_p2 }
  0x80   : > { %p1622_p4 = pnand %p1621_p11, %p1617_p3 }
  0x82   : > { %1625 = shalt.err (!%p1622_p4)
}
  0x83   : > { %s1626_s16 = scalar_lea.vmem %s2046_s26, 1024  ;;  %s1775_s1 = smov [#allocation8]  }
  0x84   : > { %p1627_p13 = scmp.ne.s32.totalorder %s2046_s26, %s1626_s16  ;;  %s1631_s18 = sshll.u32 %s1775_s1, 4  ;;  %s1632_s18 = int_to_ptr.vmem [resolvable:$false] %s1631_s18 }
  0x85   : > { %s1633_s10 = scalar_lea.vmem %s1632_s18, 2048  ;;  %p1634_p10 = scmp.lt.s32.totalorder %s2046_s26, %s1632_s18 }
  0x86   : > { %p1629_p5 = pnand %p1627_p13, %p1945_p12  ;;  %p1635_p0 = scmp.lt.s32.totalorder %s1633_s10, %s1626_s16 }
  0x88   : > { %p1630_p8 = pneg %p1629_p5  ;;  %p1636_p1 = por %p1635_p0, %p1634_p10 }
  0x8a   : > { %p1637_p2 = pnand %p1636_p1, %p1630_p8 }
  0x8c   : > { %1640 = shalt.err (!%p1637_p2)
}
  0x8d   : > { %1414 = dma.hbm_to_vmem [thread:$0]  (!%p1921_p9), %s2042_s6, 1024, %s2046_s26, %s391_s11, %s2237_s20, %s2237_s20, %s2236_s29  }
  0x8e   : > { %p2243_p12 = scmp.ne.s32.totalorder %s2229_s24, 0 }
  0x8f   : > { %s427_s12 = sand.u32 (!%p2243_p12), 1, %s1759_s14   ;;  %p2244_p3 = scmp.ne.s32.totalorder (!%p2243_p12), %s2228_s23, 0 }
  0x90   : > { %425 = sbr.rel (%p2243_p12) target bundleno = 1325 (0x52d), region = 52  ;;  %s1219_s19 = sshll.u32 (!%p2243_p12), %s427_s12, 3 }
  0x91   : > { %s428_s13 = scalar_lea.sflag (!%p2243_p12), [#allocation3], %s427_s12  ;;  %s2076_s21 = scalar_lea.vmem (!%p2243_p12), [#allocation2], %s1219_s19 }
  0x95   : > { %1730 = dma.done.wait (%p2244_p3), %s428_s13, 128  }
  0x96   : > { %1732 = vsyncadd (%p2244_p3), %s428_s13, 4294967168  ;;  %s436_s25 = sand.u32 1, %s1860_s17   ;;  %s2083_s29 = scalar_lea.vmem [#allocation5], %s1219_s19 }
  0x97   : > { %s437_s22 = scalar_lea.sflag [#allocation6], %s436_s25 }
  0x98   : > { %1734 = dma.done.wait (%p2244_p3), %s437_s22, 1152  }
  0x99   : > { %1736 = vsyncadd (%p2244_p3), %s437_s22, 4294966144  ;;  %s1221_s24 = sshll.u32 %s427_s12, 6  ;;  %s455_s6 = scalar_lea.sflag [#allocation9], %s436_s25 }
  0x9a   : > { %s2089_s20 = scalar_lea.vmem [#allocation7], %s1221_s24  ;;  %s2091_s26 = scalar_lea.vmem [#allocation8], %s1221_s24 }
  0x9b   : > { %1738 = dma.done.wait (%p2244_p3), %s455_s6, 1024  }
  0x9c   : > { %1740 = vsyncadd (%p2244_p3), %s455_s6, 4294966272  ;;  %p2245_p9 = scmp.eq.s32.totalorder %s1860_s17, 0 }
  0x9e   : > { %1742 = dma.done.wait (%p2245_p9), [#allocation9], 1024   ;;  %p2246_p6 = pmov %p2245_p9 }
  0x9f   : > { %p515_p7 = scmp.lt.s32.totalorder %s1860_s17, 1  ;;  %p2247_p11 = scmp.ne.s32.totalorder %s1860_s17, 0 }
  0xa0   : > { %1744 = vsyncadd (%p2246_p6), [#allocation9], 4294966272 }
  0xa1   : > { %s2103_s11 = scalar_select %p515_p7, %s1860_s17, 1 }
  0xa2   : > { %525 = sbr.rel (%p2247_p11) target bundleno = 169 (0xa9), region = 76 }
  0xa3   : > { %s517_s27 = scalar_lea.vmem %s2200_s4, %s2103_s11  ;;  %s520_s16 = scalar_lea.vmem %s2201_s5, %s2103_s11 }
  0xa7   : > { %v1776_v0 = vmov 0.0  }
  0xa8   : > { %526 = vst [vmem:[#allocation11] sm:$0xff] %v1776_v0  ;;  %527 = vst [vmem:[#allocation11 + $0x8] sm:$0xff] %v1776_v0 }
  0xa9 PF: > { %v1469_v1 = vld [vmem:[%s2089_s20 + $0x38] sm:$0xff]   ;;  %v1777_v2 = vmov 0.0   ;;  %v1470_v3 = vld [vmem:[%s2089_s20 + $0x30] sm:$0xff]   ;;  %vm1778_vm0 = vmmov 0   ;;  %v1471_v4 = vld [vmem:[%s2089_s20 + $0x28] sm:$0xff]   ;;  %vm656_vm1 = vcmask 130048  }
  0xaa   : > { %1302 = vmatprep.subr.bf16.mxu0 %v1777_v2  ;;  %1322 = vmatprep.subr.bf16.mxu1 %v1777_v2  ;;  %v1472_v5 = vld [vmem:[%s2089_s20 + $0x20] sm:$0xff]   ;;  %v1473_v6 = vld [vmem:[%s2089_s20 + $0x18] sm:$0xff]   ;;  %v1474_v7 = vld [vmem:[%s2089_s20 + $0x10] sm:$0xff]   ;;  %p1247_p4 = scmp.ne.s32.totalorder %s1860_s17, 1 }
  0xab   : > { %1303 = vmatpush3.bf16.msra.mxu0 %v1469_v1  ;;  %1318 = vmatprep.mubr.msk.bf16.mxu0 %vm1778_vm0, %v1777_v2  ;;  %v1475_v8 = vld [vmem:[%s2089_s20 + $0x8] sm:$0xff]   ;;  %v1476_v9 = vld [vmem:[%s2089_s20] sm:$0xff]   ;;  %v1477_v10 = vld [vmem:[%s2083_s29] sm:$0xff]  }
  0xac   : > { %1304 = vmatprep.subr.bf16.mxu0 %v1777_v2  ;;  %1324 = vmatprep.mubr.msk.bf16.mxu1 %vm1778_vm0, %v1777_v2  ;;  %v1478_v16 = vld [vmem:[%s2076_s21] sm:$0xff]   ;;  %v1479_v17 = vld [vmem:[%s2091_s26 + $0x38] sm:$0xff]   ;;  %v1480_v18 = vld [vmem:[%s2091_s26 + $0x30] sm:$0xff]  }
  0xad   : > { %v1481_v19 = vld [vmem:[%s2091_s26 + $0x28] sm:$0xff]   ;;  %v1482_v20 = vld [vmem:[%s2091_s26 + $0x20] sm:$0xff]   ;;  %v1483_v21 = vld [vmem:[%s2091_s26 + $0x18] sm:$0xff]  }
  0xae   : > { %v1484_v22 = vld [vmem:[%s2091_s26 + $0x10] sm:$0xff]   ;;  %v1485_v23 = vld [vmem:[%s2091_s26 + $0x8] sm:$0xff]   ;;  %v1486_v24 = vld [vmem:[%s2091_s26] sm:$0xff]  }
  0xaf   : > { %1305 = vmatpush3.bf16.msra.mxu0 %v1470_v3  ;;  %v1234_v25 = vld [vmem:[%s517_s27] ss:$0 sm:$0xff]  ;;  %v863_v49 = vld [vmem:[#allocation11 + $0x8] sm:$0xff] }
  0xb0   : > { %1306 = vmatprep.subr.bf16.mxu0 %v1777_v2  ;;  %v1245_v42 = vld [vmem:[%s520_s16] ss:$0 sm:$0xff] }
  0xb1   : > { %v862_v44 = vld [vmem:[#allocation11] sm:$0xff] }
  0xb3   : > { %1307 = vmatpush3.bf16.msra.mxu0 %v1471_v4 }
  0xb4   : > { %1308 = vmatprep.subr.bf16.mxu0 %v1777_v2 }
  0xb7   : > { %1309 = vmatpush3.bf16.msra.mxu0 %v1472_v5 }
  0xb8   : > { %1310 = vmatprep.subr.bf16.mxu0 %v1777_v2 }
  0xbb   : > { %1311 = vmatpush3.bf16.msra.mxu0 %v1473_v6 }
  0xbc   : > { %1312 = vmatprep.subr.bf16.mxu0 %v1777_v2 }
  0xbf   : > { %1313 = vmatpush3.bf16.msra.mxu0 %v1474_v7 }
  0xc0   : > { %1314 = vmatprep.subr.bf16.mxu0 %v1777_v2 }
  0xc3   : > { %1315 = vmatpush3.bf16.msra.mxu0 %v1475_v8 }
  0xc4   : > { %1316 = vmatprep.subr.bf16.mxu0 %v1777_v2 }
  0xc7   : > { %1317 = vmatpush3.bf16.msra.mxu0 %v1476_v9 }
  0xc8   : > { %1348 = vmatprep.subr.bf16.mxu0 %v1777_v2 }
  0xca   : > { %1319 = vmatmul.mubr.bf16.vlgmr.msra.gmra.mxu0 %v1477_v10 }
  0xcb   : > { %1350 = vmatprep.mubr.msk.bf16.mxu0 %vm1778_vm0, %v1777_v2 }
 0x18a   : > { %v636_v11 = vpop.f32.mrf.mxu0 }
 0x18c   : > { %v1320_v12 = vpop.f32.mrf.mxu0 }
 0x18e   : > { %v639_v13 = vpop.f32.mrf.mxu0 }
 0x18f   : > { %v643_v14 = vpack.c.bf16 %v639_v13, %v636_v11 }
 0x190   : > { %v1321_v15 = vpop.f32.mrf.mxu0 }
 0x191   : > { %1323 = vmatpush3.bf16.msra.mxu1 %v643_v14 }
 0x192   : > { %1328 = vmatprep.subr.bf16.mxu1 %v1777_v2 }
 0x194   : > { %1325 = vmatmul.mubr.msk.bf16.vlgmr.msra.gmra.mxu1 %vm656_vm1, %v1478_v16 }
 0x195   : > { %1329 = vmatpush3.bf16.msra.mxu1 %v1479_v17  ;;  %1344 = vmatprep.mubr.msk.bf16.mxu1 %vm1778_vm0, %v1777_v2 }
 0x196   : > { %1330 = vmatprep.subr.bf16.mxu1 %v1777_v2 }
 0x199   : > { %1331 = vmatpush3.bf16.msra.mxu1 %v1480_v18 }
 0x19a   : > { %1332 = vmatprep.subr.bf16.mxu1 %v1777_v2 }
 0x19d   : > { %1333 = vmatpush3.bf16.msra.mxu1 %v1481_v19 }
 0x19e   : > { %1334 = vmatprep.subr.bf16.mxu1 %v1777_v2 }
 0x1a1   : > { %1335 = vmatpush3.bf16.msra.mxu1 %v1482_v20 }
 0x1a2   : > { %1336 = vmatprep.subr.bf16.mxu1 %v1777_v2 }
 0x1a5   : > { %1337 = vmatpush3.bf16.msra.mxu1 %v1483_v21 }
 0x1a6   : > { %1338 = vmatprep.subr.bf16.mxu1 %v1777_v2 }
 0x1a9   : > { %1339 = vmatpush3.bf16.msra.mxu1 %v1484_v22 }
 0x1aa   : > { %1340 = vmatprep.subr.bf16.mxu1 %v1777_v2 }
 0x1ad   : > { %1341 = vmatpush3.bf16.msra.mxu1 %v1485_v23 }
 0x1ae   : > { %1342 = vmatprep.subr.bf16.mxu1 %v1777_v2 }
 0x1b1   : > { %1343 = vmatpush3.bf16.msra.mxu1 %v1486_v24 }
 0x254   : > { %v694_v26 = vpop.f32.mrf.mxu1 }
 0x255   : > { %v695_v27 = vadd.f32 %v1234_v25, %v694_v26 }
 0x256   : > { %v1326_v28 = vpop.f32.mrf.mxu1 }
 0x257   : > { %v703_v30 = vmul.f32 0.01, %v695_v27  ;;  %vm701_vm2 = vcmp.ge.f32.partialorder %v695_v27, 0.0 }
 0x258   : > { %v697_v29 = vpop.f32.mrf.mxu1 }
 0x259   : > { %v698_v31 = vadd.f32 %v1234_v25, %v697_v29  ;;  %v705_v34 = vsel %vm701_vm2, %v695_v27, %v703_v30 }
 0x25a   : > { %v1327_v32 = vpop.f32.mrf.mxu1 }
 0x25b   : > { %vm702_vm3 = vcmp.ge.f32.partialorder %v698_v31, 0.0  ;;  %v704_v33 = vmul.f32 0.01, %v698_v31 }
 0x25d   : > { %v706_v35 = vsel %vm702_vm3, %v698_v31, %v704_v33 }
 0x25e   : > { %v707_v36 = vpack.c.bf16 %v706_v35, %v705_v34 }
 0x260   : > { %1345 = vmatmul.mubr.bf16.vlgmr.msra.gmra.mxu1 %v707_v36 }
 0x320   : > { %v806_v37 = vpop.f32.mrf.mxu1 }
 0x322   : > { %v1346_v38 = vpop.f32.mrf.mxu1 }
 0x324   : > { %v809_v39 = vpop.f32.mrf.mxu1 }
 0x325   : > { %v813_v40 = vpack.c.bf16 %v809_v39, %v806_v37 }
 0x326   : > { %v1347_v41 = vpop.f32.mrf.mxu1 }
 0x327   : > { %1349 = vmatpush3.bf16.msra.mxu0 %v813_v40 }
 0x32a   : > { %1351 = vmatmul.mubr.msk.bf16.vlgmr.msra.gmra.mxu0 %vm656_vm1, %v1478_v16 }
 0x3ea   : > { %v855_v43 = vpop.f32.mrf.mxu0 }
 0x3eb   : > { %v856_v45 = vadd.f32 %v1245_v42, %v855_v43 }
 0x3ec   : > { %v1352_v46 = vpop.f32.mrf.mxu0 }
 0x3ed   : > { %v864_v47 = vadd.f32 %v862_v44, %v856_v45 }
 0x3ee   : > { %v858_v48 = vpop.f32.mrf.mxu0 }
 0x3ef   : > { %866 = vst [vmem:[#allocation11] sm:$0xff] %v864_v47  ;;  %v859_v50 = vadd.f32 %v1245_v42, %v858_v48  ;;  %871 = sbr.rel (%p1247_p4) target bundleno = 1277 (0x4fd), region = 80 }
 0x3f0   : > { %v1353_v51 = vpop.f32.mrf.mxu0 }
 0x3f1   : > { %v865_v52 = vadd.f32 %v863_v49, %v859_v50 }
 0x3f3   : > { %867 = vst [vmem:[#allocation11 + $0x8] sm:$0xff] %v865_v52 }
 0x3f4   : > { %v1487_v53 = vld [vmem:[#allocation10 + $0x38] sm:$0xff]   ;;  %v1779_v54 = vmov 0.0   ;;  %v1488_v55 = vld [vmem:[#allocation10 + $0x30] sm:$0xff]   ;;  %vm1780_vm4 = vmmov 0   ;;  %v1489_v56 = vld [vmem:[#allocation10 + $0x28] sm:$0xff]  }
 0x3f5   : > { %1354 = vmatprep.subr.bf16.mxu0 %v1779_v54  ;;  %1370 = vmatprep.mubr.msk.bf16.mxu0 %vm1780_vm4, %v1779_v54  ;;  %v1490_v57 = vld [vmem:[#allocation10 + $0x20] sm:$0xff]   ;;  %v1491_v58 = vld [vmem:[#allocation10 + $0x18] sm:$0xff]   ;;  %v1492_v59 = vld [vmem:[#allocation10 + $0x10] sm:$0xff]  }
 0x3f6   : > { %1355 = vmatpush3.bf16.msra.mxu0 %v1487_v53  ;;  %v1493_v60 = vld [vmem:[#allocation10 + $0x8] sm:$0xff]   ;;  %v1494_v61 = vld [vmem:[#allocation10] sm:$0xff]  }
 0x3f7   : > { %1356 = vmatprep.subr.bf16.mxu0 %v1779_v54  ;;  %v872_v62 = vld [vmem:[#allocation11] sm:$0xff] }
 0x3f8   : > { %v1248_v1 = vld [vmem:[%s2203_s7] ss:$0 sm:$0xff] }
 0x3fa   : > { %1357 = vmatpush3.bf16.msra.mxu0 %v1488_v55  ;;  %v873_v63 = vld [vmem:[#allocation11 + $0x8] sm:$0xff] }
 0x3fb   : > { %1358 = vmatprep.subr.bf16.mxu0 %v1779_v54  ;;  %v874_v0 = vpack.c.bf16 %v873_v63, %v872_v62 }
 0x3fe   : > { %1359 = vmatpush3.bf16.msra.mxu0 %v1489_v56 }
 0x3ff   : > { %1360 = vmatprep.subr.bf16.mxu0 %v1779_v54 }
 0x402   : > { %1361 = vmatpush3.bf16.msra.mxu0 %v1490_v57 }
 0x403   : > { %1362 = vmatprep.subr.bf16.mxu0 %v1779_v54 }
 0x406   : > { %1363 = vmatpush3.bf16.msra.mxu0 %v1491_v58 }
 0x407   : > { %1364 = vmatprep.subr.bf16.mxu0 %v1779_v54 }
 0x40a   : > { %1365 = vmatpush3.bf16.msra.mxu0 %v1492_v59 }
 0x40b   : > { %1366 = vmatprep.subr.bf16.mxu0 %v1779_v54 }
 0x40e   : > { %1367 = vmatpush3.bf16.msra.mxu0 %v1493_v60 }
 0x40f   : > { %1368 = vmatprep.subr.bf16.mxu0 %v1779_v54 }
 0x412   : > { %1369 = vmatpush3.bf16.msra.mxu0 %v1494_v61 }
 0x415   : > { %1371 = vmatmul.mubr.bf16.vlgmr.msra.gmra.mxu0 %v874_v0 }
 0x4d5   : > { %v980_v2 = vpop.f32.mrf.mxu0 }
 0x4d6   : > { %v981_v3 = vadd.f32 %v1248_v1, %v980_v2 }
 0x4d7   : > { %v1372_v4 = vpop.f32.mrf.mxu0 }
 0x4d8   : > { %987 = vst [vmem:[#allocation12] sm:$0xff] %v981_v3  ;;  %v1257_v5 = vmul.f32 -1.442695, %v981_v3 }
 0x4d9   : > { %v983_v6 = vpop.f32.mrf.mxu0 }
 0x4da   : > { %1495 = vpow2.f32 %v1257_v5  ;;  %v984_v7 = vadd.f32 %v1248_v1, %v983_v6 }
 0x4db   : > { %v1373_v8 = vpop.f32.mrf.mxu0 }
 0x4dc   : > { %988 = vst [vmem:[#allocation12 + $0x8] sm:$0xff] %v984_v7  ;;  %v1258_v9 = vmul.f32 -1.442695, %v984_v7 }
 0x4de   : > { %1497 = vpow2.f32 %v1258_v9 }
 0x4e7   : > { %v1496_v10 = vpop.eup %1495 }
 0x4e8   : > { %v995_v11 = vadd.f32 1.0, %v1496_v10 }
 0x4ea   : > { %1499 = vrcp.f32 %v995_v11 }
 0x4eb   : > { %v1498_v12 = vpop.eup %1497 }
 0x4ec   : > { %v996_v13 = vadd.f32 1.0, %v1498_v12 }
 0x4ee   : > { %1501 = vrcp.f32 %v996_v13 }
 0x4f7   : > { %v1500_v14 = vpop.eup %1499 }
 0x4f8   : > { %1001 = vst [vmem:[#allocation14] sm:$0xff] %v1500_v14 }
 0x4fb   : > { %v1502_v15 = vpop.eup %1501 }
 0x4fc   : > { %1002 = vst [vmem:[#allocation14 + $0x8] sm:$0xff] %v1502_v15 }
 0x4fd PF: > { %p1418_p13 = scmp.eq.s32.totalorder %s1860_s17, 1  ;;  %s1781_s21 = smov [#allocation12]  }
 0x4fe   : > { %s1022_s25 = sshll.u32 %s1781_s21, 4  ;;  %s1782_s22 = smov [#allocation11]   ;;  %s1023_s25 = int_to_ptr.vmem [resolvable:$true] %s1022_s25 }
 0x4ff   : > { %s1009_s29 = sshll.u32 %s1782_s22, 4  ;;  %s1641_s24 = scalar_lea.vmem %s1023_s25, 256  ;;  %s1010_s29 = int_to_ptr.vmem [resolvable:$true] %s1009_s29 }
 0x500   : > { %p1642_p5 = scmp.ne.s32.totalorder %s1023_s25, %s1641_s24  ;;  %p1648_p0 = scmp.lt.s32.totalorder %s1023_s25, %s1023_s25 }
 0x501   : > { %p1649_p1 = scmp.lt.s32.totalorder %s1641_s24, %s1641_s24 }
 0x502   : > { %p1643_p8 = pnand %p1642_p5, %p1418_p13 }
 0x503   : > { %p1650_p2 = por %p1649_p1, %p1648_p0 }
 0x504   : > { %p1644_p10 = pneg %p1643_p8 }
 0x506   : > { %p1651_p12 = pnand %p1650_p2, %p1644_p10 }
 0x508   : > { %1654 = shalt.err (!%p1651_p12)
}
 0x509   : > { %s1783_s20 = smov 128   ;;  %s1784_s6 = smov 8  }
 0x50a   : > { %1389 = dma.vmem_to_hbm [thread:$0]  (%p1418_p13), %s1023_s25, 256, %s2205_s9, [#allocation13], %s1783_s20, %s1783_s20, %s1784_s6  }
 0x50b   : > { %s1665_s15 = scalar_lea.vmem %s1010_s29, 256  ;;  %p1672_p7 = scmp.lt.s32.totalorder %s1010_s29, %s1010_s29 }
 0x50c   : > { %p1666_p3 = scmp.ne.s32.totalorder %s1010_s29, %s1665_s15  ;;  %p1673_p11 = scmp.lt.s32.totalorder %s1665_s15, %s1665_s15 }
 0x50e   : > { %p1667_p9 = pnand %p1666_p3, %p1418_p13  ;;  %p1674_p4 = por %p1673_p11, %p1672_p7 }
 0x510   : > { %p1668_p6 = pneg %p1667_p9 }
 0x512   : > { %p1675_p5 = pnand %p1674_p4, %p1668_p6 }
 0x514   : > { %1678 = shalt.err (!%p1675_p5)
}
 0x515   : > { %1387 = dma.vmem_to_hbm [thread:$0]  (%p1418_p13), %s1010_s29, 256, %s2204_s8, [#allocation4], %s1783_s20, %s1783_s20, %s1784_s6  }
 0x516   : > { %s1785_s28 = smov [#allocation14]  }
 0x517   : > { %s1035_s23 = sshll.u32 %s1785_s28, 4  ;;  %s1036_s23 = int_to_ptr.vmem [resolvable:$true] %s1035_s23 }
 0x518   : > { %s1689_s16 = scalar_lea.vmem %s1036_s23, 256  ;;  %p1696_p1 = scmp.lt.s32.totalorder %s1036_s23, %s1036_s23 }
 0x519   : > { %p1690_p8 = scmp.ne.s32.totalorder %s1036_s23, %s1689_s16  ;;  %p1697_p2 = scmp.lt.s32.totalorder %s1689_s16, %s1689_s16 }
 0x51b   : > { %p1691_p10 = pnand %p1690_p8, %p1418_p13  ;;  %p1698_p12 = por %p1697_p2, %p1696_p1 }
 0x51d   : > { %p1692_p0 = pneg %p1691_p10 }
 0x51f   : > { %p1699_p3 = pnand %p1698_p12, %p1692_p0 }
 0x521   : > { %1702 = shalt.err (!%p1699_p3)
}
 0x522   : > { %s2248_s10 = sld [smem:[#allocation26_spill]] }
 0x528   : > { %1391 = dma.vmem_to_hbm [thread:$0]  (%p1418_p13), %s1036_s23, 256, %s2248_s10, [#allocation13], %s1783_s20, %s1783_s20, %s1784_s6  }
 0x529   : > { %1746 = dma.done.wait (%p1418_p13), [#allocation4], 256  }
 0x52a   : > { %1748 = vsyncadd (%p1418_p13), [#allocation4], 4294967040 }
 0x52b   : > { %1750 = dma.done.wait (%p1418_p13), [#allocation13], 512  }
 0x52c   : > { %1752 = vsyncadd (%p1418_p13), [#allocation13], 4294966784 }
 0x52d PF: > { %s2249_s16 = sld [smem:[#allocation22_spill]]  ;;  %s2252_s13 = smov %s1759_s14 }
 0x52e   : > { %s2250_s12 = sld [smem:[#allocation21_spill]] }
 0x52f   : > { %s2251_s15 = sld [smem:[#allocation23_spill]] }
 0x533   : > { %p29_p9 = scmp.ge.s32.totalorder %s2249_s16, 4  }
 0x534   : > { %s2253_s14 = smov %s2250_s12 }
 0x535   :  { %31 = sbr.rel (!%p29_p9) target bundleno = 13 (0xd), region = 160 }
 0x53a   :  { %1059 = vsyncpa [#allocation3], 1 }
 0x53b   :  { %1061 = vsyncpa [#allocation3 + $0x1], 1 }
 0x53c   :  { %1062 = vsyncpa [#allocation6], 1 }
 0x53d   :  { %1064 = vsyncpa [#allocation6 + $0x1], 1 }
 0x53e   :  { %1065 = vsyncpa [#allocation9], 1 }
 0x53f   :  { %1067 = vsyncpa [#allocation9 + $0x1], 1 }
 0x540   :  { %1068 = vsyncpa [#allocation4], 1 }
 0x541   :  { %1070 = vsyncpa [#allocation4 + $0x1], 1 }
 0x542   :  { %1071 = vsyncpa [#allocation13], 1 }

</bundles_post_ra>
